<compile_context>
chip_gen: v6e
topology: v6e:2x2x1
jax: 0.10.0
libtpu: 0.0.40
codegen_flags: <defaults>
</compile_context>

<pallas_src>
import jax
import jax.numpy as jnp
from jax.experimental import pallas as pl
from jax.experimental.pallas import tpu as pltpu

MIN_NORM = 1e-15     # clamp on norms (as in standard hyperbolic-NN impls)
ARTANH_CLAMP = 1e-7  # artanh domain clamp
LN_EPS = 1e-5        # nn.LayerNorm default eps
PROJ_EPS = 4e-3      # float32 projection epsilon (HGCN-style PoincareBall.proj)


def _split_dot(t, m01):
    """~f32-accurate product with a 0/1 bf16 matrix on the (idle) MXU.

    t (f32) is split into hi + lo bf16 pieces (~16 mantissa bits kept), so the
    result does not depend on how Mosaic handles f32 matmul operands;
    accumulation is f32.
    """
    hi = t.astype(jnp.bfloat16)
    lo = (t - hi.astype(jnp.float32)).astype(jnp.bfloat16)
    return (jnp.dot(hi, m01, preferred_element_type=jnp.float32)
            + jnp.dot(lo, m01, preferred_element_type=jnp.float32))


def _make_kernel(p, d):
    """Kernel body for lane-packing factor p (p*d == lane width of a block)."""
    inv_d = 1.0 / d
    min_sq = MIN_NORM * MIN_NORM

    def kernel(x_ref, sc_ref, isc_ref, gamma_ref, beta_ref, *rest):
        if p == 1:
            (o_ref,) = rest
            seg_sum = lambda t: jnp.sum(t, axis=-1, keepdims=True)
            seg_bcast = lambda s: s            # (rows, 1) broadcasts vs (rows, d)
        else:
            s_ref, st_ref, o_ref = rest
            s_mat = s_ref[...]                  # (p*d, p) 0/1, bf16
            st_mat = st_ref[...]                # (p, p*d) 0/1, bf16
            seg_sum = lambda t: _split_dot(t, s_mat)     # (rows, p*d) -> (rows, p)
            seg_bcast = lambda s: _split_dot(s, st_mat)  # (rows, p) -> (rows, p*d)

        x = x_ref[...].astype(jnp.float32)      # (rows, p*d)
        sc = sc_ref[...]                        # (rows, 1)  sqrt(c) per row
        isc = isc_ref[...]                      # (rows, 1)  1/sqrt(c) per row
        gamma = gamma_ref[...]                  # (1, p*d)
        beta = beta_ref[...]                    # (1, p*d)

        # --- logmap0 row scale: artanh(sc*||x||) / (sc*||x||) per d-segment ---
        sq_x = jnp.maximum(seg_sum(x * x), min_sq)       # (rows, p)
        inv_xn = jax.lax.rsqrt(sq_x)
        xn = sq_x * inv_xn
        z = jnp.clip(sc * xn, -1.0 + ARTANH_CLAMP, 1.0 - ARTANH_CLAMP)
        artanh_z = 0.5 * jnp.log((1.0 + z) / (1.0 - z))
        scale = artanh_z * (isc * inv_xn)                # u = scale * x (never built)

        # --- LayerNorm of u folded onto x (scale is constant per segment):
        #     mean(u) = scale*mean(x), var(u) = scale^2*var(x), so
        #     LN(u) = (x - mean(x)) * scale * rsqrt(scale^2*var(x) + eps) ---
        mean_x = seg_sum(x) * inv_d
        dx = x - seg_bcast(mean_x)
        var_x = seg_sum(dx * dx) * inv_d                 # two-pass variance
        g_ln = scale * jax.lax.rsqrt(scale * scale * var_x + LN_EPS)
        v = dx * (seg_bcast(g_ln) * gamma) + beta

        # --- expmap0 + proj fused: out = v * min(tanh(sc*vn), 1-eps) / (sc*vn) ---
        sq_v = jnp.maximum(seg_sum(v * v), min_sq)
        inv_vn = jax.lax.rsqrt(sq_v)
        vn = sq_v * inv_vn
        th = jnp.tanh(sc * vn)
        factor = jnp.minimum(th, 1.0 - PROJ_EPS) * (isc * inv_vn)
        o_ref[...] = (v * seg_bcast(factor)).astype(o_ref.dtype)

    return kernel


def stereographic_layer_norm(x, gamma, beta, c, num_heads, *,
                             target_block_bytes=2 * 1024 * 1024,
                             block_rows=None,
                             pack_lanes=True,
                             vmem_limit_bytes=48 * 1024 * 1024):
    """x: [B, H, N, D]; gamma/beta: [D]; c: [1] or [H] positive curvature."""
    B, H, N, D = x.shape
    assert H == num_heads
    curv = c.reshape(-1).astype(jnp.float32)
    if curv.shape[0] == 1:
        curv = jnp.broadcast_to(curv, (H,))
    sqrt_c = jnp.sqrt(curv)                    # (H,)
    inv_sqrt_c = 1.0 / sqrt_c

    # Lane packing: place p = 128 // D rows side by side along the 128 lanes.
    p = 1
    if pack_lanes and D < 128 and 128 % D == 0 and N % (128 // D) == 0:
        p = 128 // D
    W = p * D
    R = B * H * N
    Rp = R // p
    n_pp = N // p                               # packed rows per (batch, head)

    # For p == 1 this only merges leading dims (free); for p > 1 it may cost one
    # HBM relayout copy, which the lane-dense kernel amortizes.
    # TODO(synk): accept a pre-packed / (B, H, D, N)-transposed layout upstream.
    xp = x.reshape(Rp, W)

    # N % p == 0 guarantees the p segments of a packed row share one head, so a
    # single sqrt(c) / 1/sqrt(c) scalar per packed row is enough (tiny traffic).
    sc_rows = jnp.broadcast_to(sqrt_c[None, :, None], (B, H, n_pp)).reshape(Rp, 1)
    isc_rows = jnp.broadcast_to(inv_sqrt_c[None, :, None], (B, H, n_pp)).reshape(Rp, 1)

    gamma_p = jnp.tile(gamma.astype(jnp.float32).reshape(-1), p).reshape(1, W)
    beta_p = jnp.tile(beta.astype(jnp.float32).reshape(-1), p).reshape(1, W)

    # Row tile: target ~target_block_bytes of f32 per block (amortizes the
    # ~0.35 us grid-step overhead), rounded to the sublane packing of the input
    # dtype; ceil-div grid handles ragged tails (no full-array fallback).
    itemsize = x.dtype.itemsize
    row_mult = max(8, 32 // itemsize)           # f32: 8, bf16: 16, int8/fp8: 32
    tr = block_rows if block_rows is not None else target_block_bytes // (W * 4)
    tr = max(row_mult, (tr // row_mult) * row_mult)
    if tr >= Rp:
        if Rp >= 2 * row_mult:
            # Keep >= 2 grid steps so both v7x TensorCores get work.
            tr = ((((Rp + 1) // 2) + row_mult - 1) // row_mult) * row_mult
        else:
            tr = Rp
    grid = (pl.cdiv(Rp, tr),)

    in_specs = [
        pl.BlockSpec((tr, W), lambda i: (i, 0)),   # x rows (lane-dense when p>1)
        pl.BlockSpec((tr, 1), lambda i: (i, 0)),   # sqrt(c) per row
        pl.BlockSpec((tr, 1), lambda i: (i, 0)),   # 1/sqrt(c) per row
        pl.BlockSpec((1, W), lambda i: (0, 0)),    # gamma (tiled p times)
        pl.BlockSpec((1, W), lambda i: (0, 0)),    # beta  (tiled p times)
    ]
    args = [xp, sc_rows, isc_rows, gamma_p, beta_p]
    if p > 1:
        seg_of_lane = jnp.arange(W, dtype=jnp.int32) // D          # (W,)
        seg_ids = jnp.arange(p, dtype=jnp.int32)                   # (p,)
        s_mat = (seg_of_lane[:, None] == seg_ids[None, :]).astype(jnp.bfloat16)
        st_mat = (seg_ids[:, None] == seg_of_lane[None, :]).astype(jnp.bfloat16)
        in_specs += [pl.BlockSpec((W, p), lambda i: (0, 0)),
                     pl.BlockSpec((p, W), lambda i: (0, 0))]
        args += [s_mat, st_mat]

    # TODO(synk): sweep pipeline_mode=pl.Buffered(3) on the x spec for v7x once
    # tiles are re-tuned there; low priority on v5e/v6e.
    out = pl.pallas_call(
        _make_kernel(p, D),
        out_shape=jax.ShapeDtypeStruct((Rp, W), x.dtype),
        grid_spec=pl.GridSpec(
            grid=grid,
            in_specs=in_specs,
            out_specs=pl.BlockSpec((tr, W), lambda i: (i, 0)),
        ),
        compiler_params=pltpu.CompilerParams(
            dimension_semantics=("parallel",),
            vmem_limit_bytes=vmem_limit_bytes,
        ),
    )(*args)
    return out.reshape(B, H, N, D)


def _reference(x, gamma, beta, c, num_heads):
    curv = jnp.broadcast_to(c.reshape(-1), (num_heads,)).astype(jnp.float32)
    sc = jnp.sqrt(curv)[None, :, None, None]
    xn = jnp.maximum(jnp.linalg.norm(x, axis=-1, keepdims=True), MIN_NORM)
    z = jnp.clip(sc * xn, -1 + ARTANH_CLAMP, 1 - ARTANH_CLAMP)
    u = 0.5 * jnp.log((1 + z) / (1 - z)) * x / (sc * xn)
    mean = jnp.mean(u, axis=-1, keepdims=True)
    var = jnp.mean((u - mean) ** 2, axis=-1, keepdims=True)
    v = (u - mean) / jnp.sqrt(var + LN_EPS) * gamma + beta
    vn = jnp.maximum(jnp.linalg.norm(v, axis=-1, keepdims=True), MIN_NORM)
    y = jnp.tanh(sc * vn) * v / (sc * vn)
    yn = jnp.maximum(jnp.linalg.norm(y, axis=-1, keepdims=True), MIN_NORM)
    maxnorm = (1.0 - PROJ_EPS) / sc
    return jnp.where(yn > maxnorm, y * maxnorm / yn, y)


if __name__ == "__main__":
    key = jax.random.PRNGKey(0)
    k1, k2, k3 = jax.random.split(key, 3)

    # --- small test: D=32 exercises the lane-packed (p=4) path, per-head c ---
    B, H, N, D = 2, 4, 8, 32
    gamma = jnp.ones((D,), jnp.float32)                 # nn.LayerNorm defaults
    beta = jnp.zeros((D,), jnp.float32)
    c = jnp.array([0.5, 1.0, 1.5, 2.0], jnp.float32)    # per-head curvature
    x = 0.1 * jax.random.normal(k1, (B, H, N, D), jnp.float32)

    out = jax.block_until_ready(
        stereographic_layer_norm(x, gamma, beta, c, num_heads=H))
    ref = _reference(x, gamma, beta, c, num_heads=H)
    assert out.shape == (B, H, N, D)
    assert jnp.allclose(out, ref, atol=1e-4, rtol=1e-4), "mismatch (packed D=32 path)"

    # --- larger test: D=128 (p=1, already lane-dense), single repeated c,
    #     explicit block_rows so the ceil-div grid has a ragged last block ---
    B2, H2, N2, D2 = 1, 2, 192, 128
    gamma2 = 1.0 + 0.01 * jax.random.normal(k2, (D2,), jnp.float32)
    beta2 = 0.01 * jax.random.normal(k3, (D2,), jnp.float32)
    c2 = jnp.array([1.0], jnp.float32)                   # len-1 c -> repeated
    x2 = 0.1 * jax.random.normal(k2, (B2, H2, N2, D2), jnp.float32)

    out2 = jax.block_until_ready(
        stereographic_layer_norm(x2, gamma2, beta2, c2, num_heads=H2,
                                 block_rows=256))
    ref2 = _reference(x2, gamma2, beta2, c2, num_heads=H2)
    assert out2.shape == (B2, H2, N2, D2)
    assert jnp.allclose(out2, ref2, atol=1e-4, rtol=1e-4), "mismatch (D=128 ragged path)"

    print("KERNEL_OK")
</pallas_src>

<mosaic_0001>
module attributes {stable_mosaic.version = 11 : i64} {
  func.func @kernel(%arg0: i32, %arg1: memref<8x128xf32, #tpu.memory_space<vmem>>, %arg2: memref<8x1xf32, #tpu.memory_space<vmem>>, %arg3: memref<8x1xf32, #tpu.memory_space<vmem>>, %arg4: memref<1x128xf32, #tpu.memory_space<vmem>>, %arg5: memref<1x128xf32, #tpu.memory_space<vmem>>, %arg6: memref<128x4xbf16, #tpu.memory_space<vmem>>, %arg7: memref<4x128xbf16, #tpu.memory_space<vmem>>, %arg8: memref<8x128xf32, #tpu.memory_space<vmem>>) attributes {dimension_semantics = [#tpu.dimension_semantics<parallel>], iteration_bounds = array<i64: 2>, scalar_prefetch = 0 : i64, scratch_operands = 0 : i64, tpu.core_type = #tpu.core_type<tc>, window_params = [{transform_indices = @transform_0, window_bounds = array<i64: 8, 128>}, {transform_indices = @transform_1, window_bounds = array<i64: 8, 1>}, {transform_indices = @transform_2, window_bounds = array<i64: 8, 1>}, {pipeline_mode = #tpu.pipeline_mode<synchronous>, transform_indices = @transform_3, window_bounds = array<i64: 1, 128>}, {pipeline_mode = #tpu.pipeline_mode<synchronous>, transform_indices = @transform_4, window_bounds = array<i64: 1, 128>}, {pipeline_mode = #tpu.pipeline_mode<synchronous>, transform_indices = @transform_5, window_bounds = array<i64: 128, 4>}, {pipeline_mode = #tpu.pipeline_mode<synchronous>, transform_indices = @transform_6, window_bounds = array<i64: 4, 128>}, {transform_indices = @transform_7, window_bounds = array<i64: 8, 128>}]} {
    %c0 = arith.constant 0 : index
    %c0_0 = arith.constant 0 : index
    %0 = vector.load %arg6[%c0, %c0_0] : memref<128x4xbf16, #tpu.memory_space<vmem>>, vector<128x4xbf16>
    %c0_1 = arith.constant 0 : index
    %c0_2 = arith.constant 0 : index
    %1 = vector.load %arg7[%c0_1, %c0_2] : memref<4x128xbf16, #tpu.memory_space<vmem>>, vector<4x128xbf16>
    %c0_3 = arith.constant 0 : index
    %c0_4 = arith.constant 0 : index
    %2 = vector.load %arg1[%c0_3, %c0_4] : memref<8x128xf32, #tpu.memory_space<vmem>>, vector<8x128xf32>
    %c0_5 = arith.constant 0 : index
    %c0_6 = arith.constant 0 : index
    %3 = vector.load %arg2[%c0_5, %c0_6] : memref<8x1xf32, #tpu.memory_space<vmem>>, vector<8x1xf32>
    %c0_7 = arith.constant 0 : index
    %c0_8 = arith.constant 0 : index
    %4 = vector.load %arg3[%c0_7, %c0_8] : memref<8x1xf32, #tpu.memory_space<vmem>>, vector<8x1xf32>
    %c0_9 = arith.constant 0 : index
    %c0_10 = arith.constant 0 : index
    %5 = vector.load %arg4[%c0_9, %c0_10] : memref<1x128xf32, #tpu.memory_space<vmem>>, vector<1x128xf32>
    %c0_11 = arith.constant 0 : index
    %c0_12 = arith.constant 0 : index
    %6 = vector.load %arg5[%c0_11, %c0_12] : memref<1x128xf32, #tpu.memory_space<vmem>>, vector<1x128xf32>
    %7 = arith.mulf %2, %2 : vector<8x128xf32>
    %8 = arith.truncf %7 : vector<8x128xf32> to vector<8x128xbf16>
    %9 = arith.extf %8 : vector<8x128xbf16> to vector<8x128xf32>
    %10 = arith.subf %7, %9 : vector<8x128xf32>
    %11 = arith.truncf %10 : vector<8x128xf32> to vector<8x128xbf16>
    %cst = arith.constant dense<0.000000e+00> : vector<8x4xf32>
    %12 = tpu.matmul %8, %0, %cst {dimension_numbers = #tpu.dot_dimension_numbers<[1], [0], [0], [1], [0, 0, 1, 1], [], []>} : vector<8x128xbf16>, vector<128x4xbf16>, vector<8x4xf32> -> vector<8x4xf32>
    %cst_13 = arith.constant dense<0.000000e+00> : vector<8x4xf32>
    %13 = tpu.matmul %11, %0, %cst_13 {dimension_numbers = #tpu.dot_dimension_numbers<[1], [0], [0], [1], [0, 0, 1, 1], [], []>} : vector<8x128xbf16>, vector<128x4xbf16>, vector<8x4xf32> -> vector<8x4xf32>
    %14 = arith.addf %12, %13 : vector<8x4xf32>
    %cst_14 = arith.constant 1.000000e-30 : f32
    %15 = vector.broadcast %cst_14 : f32 to vector<8x4xf32>
    %16 = arith.maximumf %14, %15 : vector<8x4xf32>
    %17 = math.rsqrt %16 : vector<8x4xf32>
    %18 = arith.mulf %16, %17 : vector<8x4xf32>
    %19 = vector.broadcast %3 : vector<8x1xf32> to vector<8x4xf32>
    %20 = arith.mulf %19, %18 : vector<8x4xf32>
    %cst_15 = arith.constant -0.99999988 : f32
    %cst_16 = arith.constant 0.99999988 : f32
    %21 = vector.broadcast %cst_15 : f32 to vector<8x4xf32>
    %22 = arith.maximumf %21, %20 : vector<8x4xf32>
    %23 = vector.broadcast %cst_16 : f32 to vector<8x4xf32>
    %24 = arith.minimumf %23, %22 : vector<8x4xf32>
    %cst_17 = arith.constant 1.000000e+00 : f32
    %25 = vector.broadcast %cst_17 : f32 to vector<8x4xf32>
    %26 = arith.addf %25, %24 : vector<8x4xf32>
    %cst_18 = arith.constant 1.000000e+00 : f32
    %27 = vector.broadcast %cst_18 : f32 to vector<8x4xf32>
    %28 = arith.subf %27, %24 : vector<8x4xf32>
    %29 = arith.divf %26, %28 : vector<8x4xf32>
    %30 = math.log %29 : vector<8x4xf32>
    %cst_19 = arith.constant 5.000000e-01 : f32
    %31 = vector.broadcast %cst_19 : f32 to vector<8x4xf32>
    %32 = arith.mulf %31, %30 : vector<8x4xf32>
    %33 = vector.broadcast %4 : vector<8x1xf32> to vector<8x4xf32>
    %34 = arith.mulf %33, %17 : vector<8x4xf32>
    %35 = arith.mulf %32, %34 : vector<8x4xf32>
    %36 = arith.truncf %2 : vector<8x128xf32> to vector<8x128xbf16>
    %37 = arith.extf %36 : vector<8x128xbf16> to vector<8x128xf32>
    %38 = arith.subf %2, %37 : vector<8x128xf32>
    %39 = arith.truncf %38 : vector<8x128xf32> to vector<8x128xbf16>
    %cst_20 = arith.constant dense<0.000000e+00> : vector<8x4xf32>
    %40 = tpu.matmul %36, %0, %cst_20 {dimension_numbers = #tpu.dot_dimension_numbers<[1], [0], [0], [1], [0, 0, 1, 1], [], []>} : vector<8x128xbf16>, vector<128x4xbf16>, vector<8x4xf32> -> vector<8x4xf32>
    %cst_21 = arith.constant dense<0.000000e+00> : vector<8x4xf32>
    %41 = tpu.matmul %39, %0, %cst_21 {dimension_numbers = #tpu.dot_dimension_numbers<[1], [0], [0], [1], [0, 0, 1, 1], [], []>} : vector<8x128xbf16>, vector<128x4xbf16>, vector<8x4xf32> -> vector<8x4xf32>
    %42 = arith.addf %40, %41 : vector<8x4xf32>
    %cst_22 = arith.constant 3.125000e-02 : f32
    %43 = vector.broadcast %cst_22 : f32 to vector<8x4xf32>
    %44 = arith.mulf %42, %43 : vector<8x4xf32>
    %45 = arith.truncf %44 : vector<8x4xf32> to vector<8x4xbf16>
    %46 = arith.extf %45 : vector<8x4xbf16> to vector<8x4xf32>
    %47 = arith.subf %44, %46 : vector<8x4xf32>
    %48 = arith.truncf %47 : vector<8x4xf32> to vector<8x4xbf16>
    %cst_23 = arith.constant dense<0.000000e+00> : vector<8x128xf32>
    %49 = tpu.matmul %45, %1, %cst_23 {dimension_numbers = #tpu.dot_dimension_numbers<[1], [0], [0], [1], [0, 0, 1, 1], [], []>} : vector<8x4xbf16>, vector<4x128xbf16>, vector<8x128xf32> -> vector<8x128xf32>
    %cst_24 = arith.constant dense<0.000000e+00> : vector<8x128xf32>
    %50 = tpu.matmul %48, %1, %cst_24 {dimension_numbers = #tpu.dot_dimension_numbers<[1], [0], [0], [1], [0, 0, 1, 1], [], []>} : vector<8x4xbf16>, vector<4x128xbf16>, vector<8x128xf32> -> vector<8x128xf32>
    %51 = arith.addf %49, %50 : vector<8x128xf32>
    %52 = arith.subf %2, %51 : vector<8x128xf32>
    %53 = arith.mulf %52, %52 : vector<8x128xf32>
    %54 = arith.truncf %53 : vector<8x128xf32> to vector<8x128xbf16>
    %55 = arith.extf %54 : vector<8x128xbf16> to vector<8x128xf32>
    %56 = arith.subf %53, %55 : vector<8x128xf32>
    %57 = arith.truncf %56 : vector<8x128xf32> to vector<8x128xbf16>
    %cst_25 = arith.constant dense<0.000000e+00> : vector<8x4xf32>
    %58 = tpu.matmul %54, %0, %cst_25 {dimension_numbers = #tpu.dot_dimension_numbers<[1], [0], [0], [1], [0, 0, 1, 1], [], []>} : vector<8x128xbf16>, vector<128x4xbf16>, vector<8x4xf32> -> vector<8x4xf32>
    %cst_26 = arith.constant dense<0.000000e+00> : vector<8x4xf32>
    %59 = tpu.matmul %57, %0, %cst_26 {dimension_numbers = #tpu.dot_dimension_numbers<[1], [0], [0], [1], [0, 0, 1, 1], [], []>} : vector<8x128xbf16>, vector<128x4xbf16>, vector<8x4xf32> -> vector<8x4xf32>
    %60 = arith.addf %58, %59 : vector<8x4xf32>
    %cst_27 = arith.constant 3.125000e-02 : f32
    %61 = vector.broadcast %cst_27 : f32 to vector<8x4xf32>
    %62 = arith.mulf %60, %61 : vector<8x4xf32>
    %63 = arith.mulf %35, %35 : vector<8x4xf32>
    %64 = arith.mulf %63, %62 : vector<8x4xf32>
    %cst_28 = arith.constant 9.99999974E-6 : f32
    %65 = vector.broadcast %cst_28 : f32 to vector<8x4xf32>
    %66 = arith.addf %64, %65 : vector<8x4xf32>
    %67 = math.rsqrt %66 : vector<8x4xf32>
    %68 = arith.mulf %35, %67 : vector<8x4xf32>
    %69 = arith.truncf %68 : vector<8x4xf32> to vector<8x4xbf16>
    %70 = arith.extf %69 : vector<8x4xbf16> to vector<8x4xf32>
    %71 = arith.subf %68, %70 : vector<8x4xf32>
    %72 = arith.truncf %71 : vector<8x4xf32> to vector<8x4xbf16>
    %cst_29 = arith.constant dense<0.000000e+00> : vector<8x128xf32>
    %73 = tpu.matmul %69, %1, %cst_29 {dimension_numbers = #tpu.dot_dimension_numbers<[1], [0], [0], [1], [0, 0, 1, 1], [], []>} : vector<8x4xbf16>, vector<4x128xbf16>, vector<8x128xf32> -> vector<8x128xf32>
    %cst_30 = arith.constant dense<0.000000e+00> : vector<8x128xf32>
    %74 = tpu.matmul %72, %1, %cst_30 {dimension_numbers = #tpu.dot_dimension_numbers<[1], [0], [0], [1], [0, 0, 1, 1], [], []>} : vector<8x4xbf16>, vector<4x128xbf16>, vector<8x128xf32> -> vector<8x128xf32>
    %75 = arith.addf %73, %74 : vector<8x128xf32>
    %76 = vector.broadcast %5 : vector<1x128xf32> to vector<8x128xf32>
    %77 = arith.mulf %75, %76 : vector<8x128xf32>
    %78 = arith.mulf %52, %77 : vector<8x128xf32>
    %79 = vector.broadcast %6 : vector<1x128xf32> to vector<8x128xf32>
    %80 = arith.addf %78, %79 : vector<8x128xf32>
    %81 = arith.mulf %80, %80 : vector<8x128xf32>
    %82 = arith.truncf %81 : vector<8x128xf32> to vector<8x128xbf16>
    %83 = arith.extf %82 : vector<8x128xbf16> to vector<8x128xf32>
    %84 = arith.subf %81, %83 : vector<8x128xf32>
    %85 = arith.truncf %84 : vector<8x128xf32> to vector<8x128xbf16>
    %cst_31 = arith.constant dense<0.000000e+00> : vector<8x4xf32>
    %86 = tpu.matmul %82, %0, %cst_31 {dimension_numbers = #tpu.dot_dimension_numbers<[1], [0], [0], [1], [0, 0, 1, 1], [], []>} : vector<8x128xbf16>, vector<128x4xbf16>, vector<8x4xf32> -> vector<8x4xf32>
    %cst_32 = arith.constant dense<0.000000e+00> : vector<8x4xf32>
    %87 = tpu.matmul %85, %0, %cst_32 {dimension_numbers = #tpu.dot_dimension_numbers<[1], [0], [0], [1], [0, 0, 1, 1], [], []>} : vector<8x128xbf16>, vector<128x4xbf16>, vector<8x4xf32> -> vector<8x4xf32>
    %88 = arith.addf %86, %87 : vector<8x4xf32>
    %cst_33 = arith.constant 1.000000e-30 : f32
    %89 = vector.broadcast %cst_33 : f32 to vector<8x4xf32>
    %90 = arith.maximumf %88, %89 : vector<8x4xf32>
    %91 = math.rsqrt %90 : vector<8x4xf32>
    %92 = arith.mulf %90, %91 : vector<8x4xf32>
    %93 = vector.broadcast %3 : vector<8x1xf32> to vector<8x4xf32>
    %94 = arith.mulf %93, %92 : vector<8x4xf32>
    %95 = math.tanh %94 : vector<8x4xf32>
    %cst_34 = arith.constant 0.995999991 : f32
    %96 = vector.broadcast %cst_34 : f32 to vector<8x4xf32>
    %97 = arith.minimumf %95, %96 : vector<8x4xf32>
    %98 = vector.broadcast %4 : vector<8x1xf32> to vector<8x4xf32>
    %99 = arith.mulf %98, %91 : vector<8x4xf32>
    %100 = arith.mulf %97, %99 : vector<8x4xf32>
    %101 = arith.truncf %100 : vector<8x4xf32> to vector<8x4xbf16>
    %102 = arith.extf %101 : vector<8x4xbf16> to vector<8x4xf32>
    %103 = arith.subf %100, %102 : vector<8x4xf32>
    %104 = arith.truncf %103 : vector<8x4xf32> to vector<8x4xbf16>
    %cst_35 = arith.constant dense<0.000000e+00> : vector<8x128xf32>
    %105 = tpu.matmul %101, %1, %cst_35 {dimension_numbers = #tpu.dot_dimension_numbers<[1], [0], [0], [1], [0, 0, 1, 1], [], []>} : vector<8x4xbf16>, vector<4x128xbf16>, vector<8x128xf32> -> vector<8x128xf32>
    %cst_36 = arith.constant dense<0.000000e+00> : vector<8x128xf32>
    %106 = tpu.matmul %104, %1, %cst_36 {dimension_numbers = #tpu.dot_dimension_numbers<[1], [0], [0], [1], [0, 0, 1, 1], [], []>} : vector<8x4xbf16>, vector<4x128xbf16>, vector<8x128xf32> -> vector<8x128xf32>
    %107 = arith.addf %105, %106 : vector<8x128xf32>
    %108 = arith.mulf %80, %107 : vector<8x128xf32>
    %c0_37 = arith.constant 0 : index
    %c0_38 = arith.constant 0 : index
    %109 = vector.load %arg8[%c0_37, %c0_38] : memref<8x128xf32, #tpu.memory_space<vmem>>, vector<8x128xf32>
    tpu.vector_store %arg8[%c0_37, %c0_38], %108 {strides = array<i32>} : memref<8x128xf32, #tpu.memory_space<vmem>>, vector<8x128xf32>,
    return
  }
  func.func @transform_0(%arg0: i32) -> (i32, i32) {
    %c0_i32 = arith.constant 0 : i32
    %c0_i32_0 = arith.constant 0 : i32
    return %arg0, %c0_i32 : i32, i32
  }
  func.func @transform_1(%arg0: i32) -> (i32, i32) {
    %c0_i32 = arith.constant 0 : i32
    %c0_i32_0 = arith.constant 0 : i32
    return %arg0, %c0_i32 : i32, i32
  }
  func.func @transform_2(%arg0: i32) -> (i32, i32) {
    %c0_i32 = arith.constant 0 : i32
    %c0_i32_0 = arith.constant 0 : i32
    return %arg0, %c0_i32 : i32, i32
  }
  func.func @transform_3(%arg0: i32) -> (i32, i32) {
    %c0_i32 = arith.constant 0 : i32
    %c0_i32_0 = arith.constant 0 : i32
    %c0_i32_1 = arith.constant 0 : i32
    return %c0_i32, %c0_i32_0 : i32, i32
  }
  func.func @transform_4(%arg0: i32) -> (i32, i32) {
    %c0_i32 = arith.constant 0 : i32
    %c0_i32_0 = arith.constant 0 : i32
    %c0_i32_1 = arith.constant 0 : i32
    return %c0_i32, %c0_i32_0 : i32, i32
  }
  func.func @transform_5(%arg0: i32) -> (i32, i32) {
    %c0_i32 = arith.constant 0 : i32
    %c0_i32_0 = arith.constant 0 : i32
    %c0_i32_1 = arith.constant 0 : i32
    return %c0_i32, %c0_i32_0 : i32, i32
  }
  func.func @transform_6(%arg0: i32) -> (i32, i32) {
    %c0_i32 = arith.constant 0 : i32
    %c0_i32_0 = arith.constant 0 : i32
    %c0_i32_1 = arith.constant 0 : i32
    return %c0_i32, %c0_i32_0 : i32, i32
  }
  func.func @transform_7(%arg0: i32) -> (i32, i32) {
    %c0_i32 = arith.constant 0 : i32
    %c0_i32_0 = arith.constant 0 : i32
    return %arg0, %c0_i32 : i32, i32
  }
}

</mosaic_0001>

<bundles_post_ra>
// kernel: tpu_custom_call.1
= control target key start
LH: loop header
LB: loop body
LE: loop exit
PB: predicated region body
PF: predicated region fallthrough
CT: control target
= control target key end

     0   :  { %12 = vsyncpa [#allocation3], 0  ;;  %s1980_s0 = inlined_call_operand.vmem [shape: f32[16,128], index: 0, kind: input, shape index: {}]   ;;  %s1981_s1 = inlined_call_operand.vmem [shape: f32[16,1], index: 1, kind: input, shape index: {}]   ;;  %s1982_s2 = inlined_call_operand.vmem [shape: f32[16,1], index: 2, kind: input, shape index: {}]   ;;  %s1983_s3 = inlined_call_operand.vmem [shape: f32[1,128], index: 3, kind: input, shape index: {}]   ;;  %s1984_s4 = inlined_call_operand.vmem [shape: f32[1,128], index: 4, kind: input, shape index: {}]   ;;  %s1985_s5 = inlined_call_operand.vmem [shape: bf16[128,4], index: 5, kind: input, shape index: {}]   ;;  %s1986_s6 = inlined_call_operand.vmem [shape: bf16[4,128], index: 6, kind: input, shape index: {}]   ;;  %s1987_s7 = inlined_call_operand.hbm [shape: f32[16,128], index: 7, kind: output, shape index: {}]  }
   0x1   :  { %14 = vsyncpa [#allocation3 + $0x1], 0  ;;  %s1626_s24 = smov 0   ;;  %s1628_s25 = smov 0  }
   0x2   :  { %s1630_s26 = smov 0   ;;  %s1632_s27 = smov 0  }
   0x3 LB: > { %s1647_s28 = sadd.s32 4294967295, %s1580_s27   ;;  %s1148_s29 = sadd.s32 4294967294, %s1580_s27   ;;  %s1580_s27 = sphi %s1632_s27, %s1993_s27   ;;  %s1576_s26 = sphi %s1630_s26, %s1992_s26   ;;  %s1572_s25 = sphi %s1628_s25, %s1991_s25   ;;  %s1568_s24 = sphi %s1626_s24, %s1990_s24  }
   0x4   : > { %s1651_s30 = sadd.s32 1, %s1580_s27   ;;  %s189_s8 = sadd.s32 1, %s1576_s26 }
   0x5   : > { %s186_s9 = ssub.s32 %s1580_s27, %s1651_s30  ;;  %p199_p0 = scmp.ne.s32.totalorder %s1576_s26, %s1572_s25 }
   0x6   : > { %p187_p1 = scmp.eq.s32.totalorder %s186_s9, 0  ;;  %p200_p2 = scmp.eq.s32.totalorder %s1647_s28, 1 }
   0x7   : > { %p205_p3 = scmp.ne.s32.totalorder %s1572_s25, %s1568_s24  ;;  %p206_p4 = scmp.eq.s32.totalorder %s1148_s29, 1 }
   0x8   : > { %s1662_s10 = scalar_select %p187_p1, %s1576_s26, %s189_s8  }
   0x9   : > { %p1664_p5 = por %p200_p2, %p199_p0  ;;  %p1668_p6 = por %p206_p4, %p205_p3 }
   0xa   : > { %p1151_p7 = scmp.ge.s32.totalorder %s1580_s27, 1  ;;  %p257_p8 = scmp.lt.s32.totalorder %s1580_s27, 3 }
   0xc   : > { %p258_p9 = pnand %p1151_p7, %p257_p8 }
   0xd   : > { %p296_p10 = scmp.lt.s32.totalorder (!%p258_p9), %s1647_s28, 1  ;;  %s293_s18 = sand.u32 (!%p258_p9), 1, %s1572_s25  }
   0xe   : > { %261 = sbr.rel (%p258_p9) target bundleno = 1384 (0x568), region = 48  ;;  %s1152_s19 = sshll.u32 (!%p258_p9), %s293_s18, 3 }
   0xf   : > { %s295_s21 = scalar_lea.vmem (!%p258_p9), [#allocation2], %s1152_s19  ;;  %s1585_s13 = smov (!%p258_p9), [#allocation2]  }
  0x10   : > { %s1065_s22 = sshll.u32 (!%p258_p9), %s295_s21, 4  ;;  %s1524_s14 = sshll.u32 (!%p258_p9), %s1585_s13, 4  ;;  %s1941_s22 = int_to_ptr.vmem [resolvable:$true] %s1065_s22  ;;  %s1525_s14 = int_to_ptr.vmem [resolvable:$false] %s1524_s14 }
  0x11   : > { %p1527_p0 = scmp.lt.s32.totalorder (!%p258_p9), %s1941_s22, %s1525_s14 }
  0x13   : > { %v1677_v0 = vld [vmem:[%s1985_s5 + $0x38] sm:$0xff]   ;;  %v1582_v1 = vmov 0.0   ;;  %v1686_v2 = vld [vmem:[%s1985_s5 + $0x30] sm:$0xff]   ;;  %vm1583_vm0 = vmmov 0   ;;  %s297_s17 = scalar_select %p296_p10, %s1647_s28, 1  ;;  %v1584_v3 = vmov 0  }
  0x14   : > { %1261 = vmatprep.subr.bf16.mxu0 %v1582_v1  ;;  %1281 = vmatprep.subr.bf16.mxu1 %v1582_v1  ;;  %v1701_v4 = vld [vmem:[%s1985_s5 + $0x28] sm:$0xff]   ;;  %v1719_v6 = vld [vmem:[%s1985_s5 + $0x20] sm:$0xff]   ;;  %v1732_v10 = vld [vmem:[%s1985_s5 + $0x18] sm:$0xff]   ;;  %vm582_vm1 = vcmask 1041408   ;;  %vm578_vm2 = vcmask 31744  }
  0x15   : > { %1262 = vmatpush3.bf16.msra.mxu0 %v1677_v0  ;;  %1282 = vmatpush3.bf16.msra.mxu1 %v1677_v0  ;;  %s1153_s20 = sshll.u32 %s297_s17, 3  ;;  %v1741_v12 = vld [vmem:[%s1985_s5 + $0x10] sm:$0xff]   ;;  %v1750_v14 = vld [vmem:[%s1985_s5 + $0x8] sm:$0xff]   ;;  %v1759_v16 = vld [vmem:[%s1985_s5] sm:$0xff]  }
  0x16   : > { %1263 = vmatprep.subr.bf16.mxu0 %v1582_v1  ;;  %1283 = vmatprep.subr.bf16.mxu1 %v1582_v1  ;;  %s299_s23 = scalar_lea.vmem %s1980_s0, %s1153_s20  ;;  %s303_s9 = scalar_lea.vmem %s1981_s1, %s1153_s20  ;;  %v325_v22 = vld [vmem:[%s1986_s6] sm:$0x3] }
  0x17   : > { %1277 = vmatprep.mubr.msk.bf16.mxu0 %vm1583_vm0, %v1582_v1  ;;  %1297 = vmatprep.mubr.msk.bf16.mxu1 %vm1583_vm0, %v1582_v1  ;;  %v327_v5 = vld [vmem:[%s303_s9] sm:$0xff]  ;;  %s307_s15 = scalar_lea.vmem %s1982_s2, %s1153_s20  ;;  %v1813_v23 = vsel %vm582_vm1, %v325_v22, 0  ;;  %s1174_s20 = sshll.u32 %s1647_s28, 7 }
  0x18   : > { %1499 = vset.pattern.permute.xlu0 %v1584_v3  ;;  %v1721_v7 = vld [vmem:[%s299_s23] sm:$0xff]  ;;  %s1939_s8 = scalar_lea.hbm %s1987_s7, %s1174_s20  ;;  %s1052_s9 = scalar_lea.sflag [#allocation3], %s293_s18 }
  0x19   : > { %1264 = vmatpush3.bf16.msra.mxu0 %v1686_v2  ;;  %1284 = vmatpush3.bf16.msra.mxu1 %v1686_v2  ;;  %v328_v8 = vld [vmem:[%s307_s15] sm:$0xff]  ;;  %v331_v9 = vmul.f32 %v1721_v7, %v1721_v7  ;;  %v489_v18 = vpack.c.bf16 %v1721_v7, %v1721_v7  ;;  %s1520_s28 = scalar_lea.vmem %s1941_s22, 128  ;;  %s1526_s15 = scalar_lea.vmem %s1525_s14, 256 }
  0x1a   : > { %1265 = vmatprep.subr.bf16.mxu0 %v1582_v1  ;;  %1285 = vmatprep.subr.bf16.mxu1 %v1582_v1  ;;  %p1521_p11 = scmp.ne.s32.totalorder %s1941_s22, %s1520_s28  ;;  %p1528_p1 = scmp.lt.s32.totalorder %s1526_s15, %s1520_s28 }
  0x1b   : > { %469 = vperm.xlu0 %1499, %v327_v5   ;;  %v332_v11 = vpack.c.bf16 %v331_v9, %v331_v9  ;;  %v490_v19 = vunpack.c.l.bf16 %v489_v18 }
  0x1c   : > { %p1522_p12 = pnand %p1521_p11, %p1664_p5  ;;  %p1529_p2 = por %p1528_p1, %p1527_p0 }
  0x1d   : > { %1266 = vmatpush3.bf16.msra.mxu0 %v1701_v4  ;;  %1286 = vmatpush3.bf16.msra.mxu1 %v1701_v4  ;;  %v333_v13 = vunpack.c.l.bf16 %v332_v11  ;;  %v491_v20 = vsub.f32 %v1721_v7, %v490_v19 }
  0x1e   : > { %1267 = vmatprep.subr.bf16.mxu0 %v1582_v1  ;;  %1287 = vmatprep.subr.bf16.mxu1 %v1582_v1  ;;  %p1523_p13 = pneg %p1522_p12 }
  0x1f   : > { %484 = vperm.xlu0 %1499, %v328_v8   ;;  %v334_v15 = vsub.f32 %v331_v9, %v333_v13  ;;  %v492_v21 = vpack.c.bf16 %v491_v20, %v491_v20 }
  0x20   : > { %p1530_p3 = pnand %p1529_p2, %p1523_p13 }
  0x21   : > { %1268 = vmatpush3.bf16.msra.mxu0 %v1719_v6  ;;  %1288 = vmatpush3.bf16.msra.mxu1 %v1719_v6  ;;  %v335_v17 = vpack.c.bf16 %v334_v15, %v334_v15 }
  0x22   : > { %1269 = vmatprep.subr.bf16.mxu0 %v1582_v1  ;;  %1289 = vmatprep.subr.bf16.mxu1 %v1582_v1 }
  0x25   : > { %1270 = vmatpush3.bf16.msra.mxu0 %v1732_v10  ;;  %1290 = vmatpush3.bf16.msra.mxu1 %v1732_v10 }
  0x26   : > { %1271 = vmatprep.subr.bf16.mxu0 %v1582_v1  ;;  %1291 = vmatprep.subr.bf16.mxu1 %v1582_v1 }
  0x29   : > { %1272 = vmatpush3.bf16.msra.mxu0 %v1741_v12  ;;  %1292 = vmatpush3.bf16.msra.mxu1 %v1741_v12 }
  0x2a   : > { %1273 = vmatprep.subr.bf16.mxu0 %v1582_v1  ;;  %1293 = vmatprep.subr.bf16.mxu1 %v1582_v1 }
  0x2d   : > { %1274 = vmatpush3.bf16.msra.mxu0 %v1750_v14  ;;  %1294 = vmatpush3.bf16.msra.mxu1 %v1750_v14 }
  0x2e   : > { %1275 = vmatprep.subr.bf16.mxu0 %v1582_v1  ;;  %1295 = vmatprep.subr.bf16.mxu1 %v1582_v1 }
  0x31   : > { %1276 = vmatpush3.bf16.msra.mxu0 %v1759_v16  ;;  %1296 = vmatpush3.bf16.msra.mxu1 %v1759_v16 }
  0x32   : > { %1301 = vmatprep.subr.bf16.mxu0 %v1582_v1  ;;  %1321 = vmatprep.subr.bf16.mxu1 %v1582_v1 }
  0x34   : > { %1278 = vmatmul.mubr.bf16.vlgmr.msra.gmra.mxu0 %v335_v17  ;;  %1298 = vmatmul.mubr.bf16.vlgmr.msra.gmra.mxu1 %v332_v11 }
  0x35   : > { %1302 = vmatpush3.bf16.msra.mxu0 %v1677_v0  ;;  %1322 = vmatpush3.bf16.msra.mxu1 %v1677_v0 }
  0x36   : > { %1303 = vmatprep.subr.bf16.mxu0 %v1582_v1  ;;  %1323 = vmatprep.subr.bf16.mxu1 %v1582_v1 }
  0x37   : > { %1317 = vmatprep.mubr.msk.bf16.mxu0 %vm1583_vm0, %v1582_v1  ;;  %1337 = vmatprep.mubr.msk.bf16.mxu1 %vm1583_vm0, %v1582_v1 }
  0x39   : > { %1304 = vmatpush3.bf16.msra.mxu0 %v1686_v2  ;;  %1324 = vmatpush3.bf16.msra.mxu1 %v1686_v2 }
  0x3a   : > { %1305 = vmatprep.subr.bf16.mxu0 %v1582_v1  ;;  %1325 = vmatprep.subr.bf16.mxu1 %v1582_v1 }
  0x3d   : > { %1306 = vmatpush3.bf16.msra.mxu0 %v1701_v4  ;;  %1326 = vmatpush3.bf16.msra.mxu1 %v1701_v4 }
  0x3e   : > { %1307 = vmatprep.subr.bf16.mxu0 %v1582_v1  ;;  %1327 = vmatprep.subr.bf16.mxu1 %v1582_v1 }
  0x41   : > { %1308 = vmatpush3.bf16.msra.mxu0 %v1719_v6  ;;  %1328 = vmatpush3.bf16.msra.mxu1 %v1719_v6 }
  0x42   : > { %1309 = vmatprep.subr.bf16.mxu0 %v1582_v1  ;;  %1329 = vmatprep.subr.bf16.mxu1 %v1582_v1 }
  0x45   : > { %1310 = vmatpush3.bf16.msra.mxu0 %v1732_v10  ;;  %1330 = vmatpush3.bf16.msra.mxu1 %v1732_v10 }
  0x46   : > { %1311 = vmatprep.subr.bf16.mxu0 %v1582_v1  ;;  %1331 = vmatprep.subr.bf16.mxu1 %v1582_v1 }
  0x49   : > { %1312 = vmatpush3.bf16.msra.mxu0 %v1741_v12  ;;  %1332 = vmatpush3.bf16.msra.mxu1 %v1741_v12 }
  0x4a   : > { %1313 = vmatprep.subr.bf16.mxu0 %v1582_v1  ;;  %1333 = vmatprep.subr.bf16.mxu1 %v1582_v1 }
  0x4d   : > { %1314 = vmatpush3.bf16.msra.mxu0 %v1750_v14  ;;  %1334 = vmatpush3.bf16.msra.mxu1 %v1750_v14 }
  0x4e   : > { %1315 = vmatprep.subr.bf16.mxu0 %v1582_v1  ;;  %1335 = vmatprep.subr.bf16.mxu1 %v1582_v1 }
  0x51   : > { %1316 = vmatpush3.bf16.msra.mxu0 %v1759_v16  ;;  %1336 = vmatpush3.bf16.msra.mxu1 %v1759_v16 }
  0x52   : > { %1347 = vmatprep.subr.bf16.mxu1 %v1582_v1  ;;  %1341 = vmatprep.subr.bf16.mxu0 %v1582_v1 }
  0x54   : > { %1318 = vmatmul.mubr.bf16.vlgmr.msra.gmra.mxu0 %v492_v21  ;;  %1338 = vmatmul.mubr.bf16.vlgmr.msra.gmra.mxu1 %v489_v18 }
  0x55   : > { %1349 = vmatprep.mubr.msk.bf16.mxu1 %vm1583_vm0, %v1582_v1  ;;  %1343 = vmatprep.mubr.msk.bf16.mxu0 %vm1583_vm0, %v1582_v1 }
  0x56   : > { %1348 = vmatpush3.bf16.msra.mxu1 %v1813_v23  ;;  %1342 = vmatpush3.bf16.msra.mxu0 %v1813_v23 }
  0x57   : > { %1373 = vmatprep.subr.bf16.mxu1 %v1582_v1  ;;  %1353 = vmatprep.subr.bf16.mxu0 %v1582_v1 }
  0x96   : > { %v1873_v5 = vpop.permute.xlu0 %469 }
  0x9a   : > { %v1876_v19 = vpop.permute.xlu0 %484 }
  0xf4   : > { %v418_v24 = vpop.f32.mrf.mxu0  ;;  %v458_v25 = vpop.f32.mrf.mxu1 }
  0xf5   : > { %v1819_v26 = vadd.f32 %v458_v25, %v418_v24 }
  0xf6   : > { %v1279_v27 = vpop.f32.mrf.mxu0  ;;  %v1299_v28 = vpop.f32.mrf.mxu1 }
  0xf7   : > { %v464_v62 = vmax.f32 %v1819_v26, 1e-30 }
  0xf8   : > { %v421_v29 = vpop.f32.mrf.mxu0  ;;  %v461_v30 = vpop.f32.mrf.mxu1 }
  0xf9   : > { %1508 = vrsqrt.f32 %v464_v62 }
  0xfa   : > { %v1280_v31 = vpop.f32.mrf.mxu0  ;;  %v1300_v32 = vpop.f32.mrf.mxu1 }
 0x106   : > { %v1509_v63 = vpop.eup %1508 }
 0x107   : > { %v466_v3 = vmul.f32 %v1509_v63, %v464_v62  ;;  %v487_v24 = vmul.f32 %v1509_v63, %v1876_v19 }
 0x114   : > { %v527_v33 = vpop.f32.mrf.mxu0  ;;  %v567_v34 = vpop.f32.mrf.mxu1 }
 0x115   : > { %v568_v35 = vadd.f32 %v567_v34, %v527_v33 }
 0x116   : > { %v1319_v36 = vpop.f32.mrf.mxu0  ;;  %v1339_v37 = vpop.f32.mrf.mxu1 }
 0x117   : > { %v573_v38 = vmul.f32 0.03125, %v568_v35 }
 0x118   : > { %v530_v39 = vpop.f32.mrf.mxu0  ;;  %v570_v40 = vpop.f32.mrf.mxu1 }
 0x119   : > { %v574_v41 = vpack.c.bf16 %v573_v38, %v573_v38 }
 0x11a   : > { %v1320_v42 = vpop.f32.mrf.mxu0  ;;  %v1340_v43 = vpop.f32.mrf.mxu1 }
 0x11b   : > { %v575_v44 = vunpack.c.l.bf16 %v574_v41  ;;  %1350 = vmatmul.mubr.msk.bf16.vlgmr.msra.gmra.mxu1 %vm578_vm2, %v574_v41 }
 0x11c   : > { %1374 = vmatpush3.bf16.msra.mxu1 %v1677_v0  ;;  %1389 = vmatprep.mubr.msk.bf16.mxu1 %vm1583_vm0, %v1582_v1 }
 0x11d   : > { %v576_v45 = vsub.f32 %v573_v38, %v575_v44  ;;  %1375 = vmatprep.subr.bf16.mxu1 %v1582_v1 }
 0x11f   : > { %v577_v46 = vpack.c.bf16 %v576_v45, %v576_v45 }
 0x120   : > { %1376 = vmatpush3.bf16.msra.mxu1 %v1686_v2 }
 0x121   : > { %1344 = vmatmul.mubr.msk.bf16.vlgmr.msra.gmra.mxu0 %vm578_vm2, %v577_v46  ;;  %1377 = vmatprep.subr.bf16.mxu1 %v1582_v1 }
 0x122   : > { %1354 = vmatpush3.bf16.msra.mxu0 %v1677_v0  ;;  %1369 = vmatprep.mubr.msk.bf16.mxu0 %vm1583_vm0, %v1582_v1 }
 0x123   : > { %1355 = vmatprep.subr.bf16.mxu0 %v1582_v1 }
 0x124   : > { %1378 = vmatpush3.bf16.msra.mxu1 %v1701_v4 }
 0x125   : > { %1379 = vmatprep.subr.bf16.mxu1 %v1582_v1 }
 0x126   : > { %1356 = vmatpush3.bf16.msra.mxu0 %v1686_v2 }
 0x127   : > { %1357 = vmatprep.subr.bf16.mxu0 %v1582_v1 }
 0x128   : > { %1380 = vmatpush3.bf16.msra.mxu1 %v1719_v6 }
 0x129   : > { %1381 = vmatprep.subr.bf16.mxu1 %v1582_v1 }
 0x12a   : > { %1358 = vmatpush3.bf16.msra.mxu0 %v1701_v4 }
 0x12b   : > { %1359 = vmatprep.subr.bf16.mxu0 %v1582_v1 }
 0x12c   : > { %1382 = vmatpush3.bf16.msra.mxu1 %v1732_v10 }
 0x12d   : > { %1383 = vmatprep.subr.bf16.mxu1 %v1582_v1 }
 0x12e   : > { %1360 = vmatpush3.bf16.msra.mxu0 %v1719_v6 }
 0x12f   : > { %1361 = vmatprep.subr.bf16.mxu0 %v1582_v1 }
 0x130   : > { %1384 = vmatpush3.bf16.msra.mxu1 %v1741_v12 }
 0x131   : > { %1385 = vmatprep.subr.bf16.mxu1 %v1582_v1 }
 0x132   : > { %1362 = vmatpush3.bf16.msra.mxu0 %v1732_v10 }
 0x133   : > { %1363 = vmatprep.subr.bf16.mxu0 %v1582_v1 }
 0x134   : > { %1386 = vmatpush3.bf16.msra.mxu1 %v1750_v14 }
 0x135   : > { %1387 = vmatprep.subr.bf16.mxu1 %v1582_v1 }
 0x136   : > { %1364 = vmatpush3.bf16.msra.mxu0 %v1741_v12 }
 0x137   : > { %1365 = vmatprep.subr.bf16.mxu0 %v1582_v1 }
 0x138   : > { %1388 = vmatpush3.bf16.msra.mxu1 %v1759_v16 }
 0x139   : > { %1399 = vmatprep.subr.bf16.mxu1 %v1582_v1 }
 0x13a   : > { %1366 = vmatpush3.bf16.msra.mxu0 %v1750_v14 }
 0x13b   : > { %1367 = vmatprep.subr.bf16.mxu0 %v1582_v1 }
 0x13e   : > { %1368 = vmatpush3.bf16.msra.mxu0 %v1759_v16 }
 0x13f   : > { %1393 = vmatprep.subr.bf16.mxu0 %v1582_v1 }
 0x1db   : > { %v663_v47 = vpop.f32.mrf.mxu1 }
 0x1dd   : > { %v1351_v48 = vpop.f32.mrf.mxu1 }
 0x1df   : > { %v666_v49 = vpop.f32.mrf.mxu1 }
 0x1e1   : > { %v620_v50 = vpop.f32.mrf.mxu0  ;;  %v1352_v51 = vpop.f32.mrf.mxu1 }
 0x1e2   : > { %v664_v52 = vadd.f32 %v663_v47, %v620_v50 }
 0x1e3   : > { %v1345_v53 = vpop.f32.mrf.mxu0 }
 0x1e4   : > { %v1860_v54 = vsub.f32 %v1721_v7, %v664_v52  ;;  %v472_v7 = vmul.f32 %v1873_v5, %v466_v3 }
 0x1e5   : > { %v623_v55 = vpop.f32.mrf.mxu0 }
 0x1e6   : > { %v670_v56 = vmul.f32 %v1860_v54, %v1860_v54  ;;  %v1164_v8 = vclamps-f32 %v472_v7, 0.9999999 }
 0x1e7   : > { %v1346_v57 = vpop.f32.mrf.mxu0 }
 0x1e8   : > { %v671_v58 = vpack.c.bf16 %v670_v56, %v670_v56  ;;  %v476_v9 = vsub.f32 1.0, %v1164_v8  ;;  %v475_v13 = vadd.f32 1.0, %v1164_v8 }
 0x1ea   : > { %v672_v59 = vunpack.c.l.bf16 %v671_v58  ;;  %1390 = vmatmul.mubr.bf16.vlgmr.msra.gmra.mxu1 %v671_v58  ;;  %1510 = vrcp.f32 %v476_v9 }
 0x1eb   : > { %1400 = vmatpush3.bf16.msra.mxu1 %v1813_v23  ;;  %1401 = vmatprep.mubr.msk.bf16.mxu1 %vm1583_vm0, %v1582_v1 }
 0x1ec   : > { %v673_v60 = vsub.f32 %v670_v56, %v672_v59  ;;  %1425 = vmatprep.subr.bf16.mxu1 %v1582_v1 }
 0x1ee   : > { %v674_v61 = vpack.c.bf16 %v673_v60, %v673_v60 }
 0x1f0   : > { %1370 = vmatmul.mubr.bf16.vlgmr.msra.gmra.mxu0 %v674_v61 }
 0x1f1   : > { %1394 = vmatpush3.bf16.msra.mxu0 %v1813_v23  ;;  %1395 = vmatprep.mubr.msk.bf16.mxu0 %vm1583_vm0, %v1582_v1 }
 0x1f2   : > { %1405 = vmatprep.subr.bf16.mxu0 %v1582_v1 }
 0x1f7   : > { %v1511_v11 = vpop.eup %1510 }
 0x1f8   : > { %v478_v15 = vmul.f32 %v1511_v11, %v475_v13 }
 0x1fa   : > { %1512 = vlog2.f32 %v478_v15 }
 0x207   : > { %v1513_v17 = vpop.eup %1512 }
 0x208   : > { %v480_v18 = vmul.f32 0.6931472, %v1513_v17 }
 0x20a   : > { %v481_v21 = vmul.f32 0.5, %v480_v18 }
 0x20c   : > { %v488_v26 = vmul.f32 %v487_v24, %v481_v21 }
 0x20e   : > { %v756_v31 = vmul.f32 %v488_v26, %v488_v26 }
 0x2aa   : > { %v749_v20 = vpop.f32.mrf.mxu1 }
 0x2ac   : > { %v1391_v22 = vpop.f32.mrf.mxu1 }
 0x2ae   : > { %v752_v25 = vpop.f32.mrf.mxu1 }
 0x2b0   : > { %v709_v27 = vpop.f32.mrf.mxu0  ;;  %v1392_v28 = vpop.f32.mrf.mxu1 }
 0x2b1   : > { %v750_v29 = vadd.f32 %v749_v20, %v709_v27 }
 0x2b2   : > { %v1371_v30 = vpop.f32.mrf.mxu0 }
 0x2b3   : > { %v755_v32 = vmul.f32 0.03125, %v750_v29 }
 0x2b4   : > { %v712_v33 = vpop.f32.mrf.mxu0 }
 0x2b5   : > { %v757_v34 = vmul.f32 %v756_v31, %v755_v32 }
 0x2b6   : > { %v1372_v35 = vpop.f32.mrf.mxu0 }
 0x2b7   : > { %v758_v36 = vadd.f32 1e-05, %v757_v34 }
 0x2b9   : > { %1514 = vrsqrt.f32 %v758_v36 }
 0x2c6   : > { %v1515_v37 = vpop.eup %1514 }
 0x2c7   : > { %v760_v38 = vmul.f32 %v1515_v37, %v488_v26 }
 0x2c9   : > { %v761_v39 = vpack.c.bf16 %v760_v38, %v760_v38 }
 0x2cb   : > { %v762_v40 = vunpack.c.l.bf16 %v761_v39  ;;  %1402 = vmatmul.mubr.msk.bf16.vlgmr.msra.gmra.mxu1 %vm578_vm2, %v761_v39 }
 0x2cc   : > { %1426 = vmatpush3.bf16.msra.mxu1 %v1677_v0  ;;  %1441 = vmatprep.mubr.msk.bf16.mxu1 %vm1583_vm0, %v1582_v1 }
 0x2cd   : > { %v763_v41 = vsub.f32 %v760_v38, %v762_v40  ;;  %1427 = vmatprep.subr.bf16.mxu1 %v1582_v1 }
 0x2cf   : > { %v764_v42 = vpack.c.bf16 %v763_v41, %v763_v41 }
 0x2d0   : > { %1428 = vmatpush3.bf16.msra.mxu1 %v1686_v2 }
 0x2d1   : > { %1396 = vmatmul.mubr.msk.bf16.vlgmr.msra.gmra.mxu0 %vm578_vm2, %v764_v42  ;;  %1429 = vmatprep.subr.bf16.mxu1 %v1582_v1 }
 0x2d2   : > { %1406 = vmatpush3.bf16.msra.mxu0 %v1677_v0  ;;  %1421 = vmatprep.mubr.msk.bf16.mxu0 %vm1583_vm0, %v1582_v1 }
 0x2d3   : > { %1407 = vmatprep.subr.bf16.mxu0 %v1582_v1 }
 0x2d4   : > { %1430 = vmatpush3.bf16.msra.mxu1 %v1701_v4 }
 0x2d5   : > { %1431 = vmatprep.subr.bf16.mxu1 %v1582_v1 }
 0x2d6   : > { %1408 = vmatpush3.bf16.msra.mxu0 %v1686_v2 }
 0x2d7   : > { %1409 = vmatprep.subr.bf16.mxu0 %v1582_v1 }
 0x2d8   : > { %1432 = vmatpush3.bf16.msra.mxu1 %v1719_v6 }
 0x2d9   : > { %1433 = vmatprep.subr.bf16.mxu1 %v1582_v1 }
 0x2da   : > { %1410 = vmatpush3.bf16.msra.mxu0 %v1701_v4 }
 0x2db   : > { %1411 = vmatprep.subr.bf16.mxu0 %v1582_v1 }
 0x2dc   : > { %1434 = vmatpush3.bf16.msra.mxu1 %v1732_v10 }
 0x2dd   : > { %1435 = vmatprep.subr.bf16.mxu1 %v1582_v1 }
 0x2de   : > { %1412 = vmatpush3.bf16.msra.mxu0 %v1719_v6  ;;  %v1169_v6 = vld [vmem:[%s1983_s3] ss:$0 sm:$0xff] }
 0x2df   : > { %1413 = vmatprep.subr.bf16.mxu0 %v1582_v1 }
 0x2e0   : > { %1436 = vmatpush3.bf16.msra.mxu1 %v1741_v12 }
 0x2e1   : > { %1437 = vmatprep.subr.bf16.mxu1 %v1582_v1 }
 0x2e2   : > { %1414 = vmatpush3.bf16.msra.mxu0 %v1732_v10 }
 0x2e3   : > { %1415 = vmatprep.subr.bf16.mxu0 %v1582_v1 }
 0x2e4   : > { %1438 = vmatpush3.bf16.msra.mxu1 %v1750_v14 }
 0x2e5   : > { %1439 = vmatprep.subr.bf16.mxu1 %v1582_v1 }
 0x2e6   : > { %1416 = vmatpush3.bf16.msra.mxu0 %v1741_v12 }
 0x2e7   : > { %1417 = vmatprep.subr.bf16.mxu0 %v1582_v1 }
 0x2e8   : > { %1440 = vmatpush3.bf16.msra.mxu1 %v1759_v16 }
 0x2e9   : > { %1451 = vmatprep.subr.bf16.mxu1 %v1582_v1 }
 0x2ea   : > { %1418 = vmatpush3.bf16.msra.mxu0 %v1750_v14  ;;  %v1170_v14 = vld [vmem:[%s1984_s4] ss:$0 sm:$0xff] }
 0x2eb   : > { %1419 = vmatprep.subr.bf16.mxu0 %v1582_v1 }
 0x2ee   : > { %1420 = vmatpush3.bf16.msra.mxu0 %v1759_v16 }
 0x2ef   : > { %1445 = vmatprep.subr.bf16.mxu0 %v1582_v1 }
 0x38b   : > { %v845_v0 = vpop.f32.mrf.mxu1 }
 0x38d   : > { %v1403_v2 = vpop.f32.mrf.mxu1 }
 0x38f   : > { %v848_v4 = vpop.f32.mrf.mxu1 }
 0x391   : > { %v802_v10 = vpop.f32.mrf.mxu0  ;;  %v1404_v12 = vpop.f32.mrf.mxu1 }
 0x392   : > { %v846_v43 = vadd.f32 %v845_v0, %v802_v10 }
 0x393   : > { %v1397_v44 = vpop.f32.mrf.mxu0 }
 0x394   : > { %v857_v45 = vmul.f32 %v1169_v6, %v846_v43 }
 0x395   : > { %v805_v46 = vpop.f32.mrf.mxu0 }
 0x396   : > { %v858_v16 = vmul.f32 %v857_v45, %v1860_v54 }
 0x397   : > { %v1398_v47 = vpop.f32.mrf.mxu0 }
 0x398   : > { %v865_v48 = vadd.f32 %v1170_v14, %v858_v16 }
 0x39a   : > { %v866_v49 = vmul.f32 %v865_v48, %v865_v48 }
 0x39c   : > { %v867_v50 = vpack.c.bf16 %v866_v49, %v866_v49 }
 0x39e   : > { %v868_v51 = vunpack.c.l.bf16 %v867_v50  ;;  %1442 = vmatmul.mubr.bf16.vlgmr.msra.gmra.mxu1 %v867_v50 }
 0x39f   : > { %1452 = vmatpush3.bf16.msra.mxu1 %v1813_v23  ;;  %1453 = vmatprep.mubr.msk.bf16.mxu1 %vm1583_vm0, %v1582_v1 }
 0x3a0   : > { %v869_v52 = vsub.f32 %v866_v49, %v868_v51 }
 0x3a2   : > { %v870_v53 = vpack.c.bf16 %v869_v52, %v869_v52 }
 0x3a4   : > { %1422 = vmatmul.mubr.bf16.vlgmr.msra.gmra.mxu0 %v870_v53 }
 0x3a5   : > { %1446 = vmatpush3.bf16.msra.mxu0 %v1813_v23  ;;  %1447 = vmatprep.mubr.msk.bf16.mxu0 %vm1583_vm0, %v1582_v1 }
 0x45e   : > { %v945_v54 = vpop.f32.mrf.mxu1 }
 0x460   : > { %v1443_v55 = vpop.f32.mrf.mxu1 }
 0x462   : > { %v948_v56 = vpop.f32.mrf.mxu1 }
 0x464   : > { %v905_v57 = vpop.f32.mrf.mxu0  ;;  %v1444_v58 = vpop.f32.mrf.mxu1 }
 0x465   : > { %v946_v59 = vadd.f32 %v945_v54, %v905_v57 }
 0x466   : > { %v1423_v60 = vpop.f32.mrf.mxu0 }
 0x467   : > { %v951_v61 = vmax.f32 %v946_v59, 1e-30 }
 0x468   : > { %v908_v62 = vpop.f32.mrf.mxu0 }
 0x469   : > { %1516 = vrsqrt.f32 %v951_v61 }
 0x46a   : > { %v1424_v63 = vpop.f32.mrf.mxu0 }
 0x476   : > { %v1517_v3 = vpop.eup %1516 }
 0x477   : > { %v953_v7 = vmul.f32 %v1517_v3, %v951_v61  ;;  %v957_v1 = vmul.f32 %v1517_v3, %v1876_v19 }
 0x479   : > { %v954_v8 = vmul.f32 %v953_v7, %v1873_v5 }
 0x47b   : > { %1518 = vtanh.f32 %v954_v8 }
 0x488   : > { %v1519_v23 = vpop.eup %1518 }
 0x489   : > { %v956_v9 = vmin.f32 %v1519_v23, 0.996 }
 0x48b   : > { %v958_v11 = vmul.f32 %v957_v1, %v956_v9 }
 0x48d   : > { %v959_v13 = vpack.c.bf16 %v958_v11, %v958_v11 }
 0x48f   : > { %v960_v15 = vunpack.c.l.bf16 %v959_v13  ;;  %1454 = vmatmul.mubr.msk.bf16.vlgmr.msra.gmra.mxu1 %vm578_vm2, %v959_v13 }
 0x491   : > { %v961_v17 = vsub.f32 %v958_v11, %v960_v15 }
 0x493   : > { %v962_v18 = vpack.c.bf16 %v961_v17, %v961_v17 }
 0x495   : > { %1448 = vmatmul.mubr.msk.bf16.vlgmr.msra.gmra.mxu0 %vm578_vm2, %v962_v18 }
 0x54f   : > { %v1043_v20 = vpop.f32.mrf.mxu1 }
 0x551   : > { %v1455_v21 = vpop.f32.mrf.mxu1 }
 0x553   : > { %v1046_v5 = vpop.f32.mrf.mxu1 }
 0x555   : > { %v1000_v22 = vpop.f32.mrf.mxu0  ;;  %v1456_v24 = vpop.f32.mrf.mxu1 }
 0x556   : > { %v1044_v19 = vadd.f32 %v1043_v20, %v1000_v22 }
 0x557   : > { %v1449_v25 = vpop.f32.mrf.mxu0 }
 0x558   : > { %v1049_v26 = vmul.f32 %v1044_v19, %v865_v48 }
 0x559   : > { %v1003_v27 = vpop.f32.mrf.mxu0 }
 0x55a   : > { %1050 = vst [vmem:[%s295_s21] sm:$0xff] %v1049_v26 }
 0x55b   : > { %v1450_v28 = vpop.f32.mrf.mxu0 }
 0x55c   : > { %1533 = shalt.err (!%p1530_p3)
}
 0x55d   : > { %s1534_s16 = scalar_lea.hbm %s1939_s8, 128  ;;  %s1538_s19 = scalar_lea.hbm %s1987_s7, 256 }
 0x55e   : > { %p1535_p4 = scmp.ne.s32.totalorder %s1939_s8, %s1534_s16  ;;  %p1539_p9 = scmp.lt.s32.totalorder %s1939_s8, %s1987_s7 }
 0x55f   : > { %p1540_p10 = scmp.lt.s32.totalorder %s1538_s19, %s1534_s16 }
 0x560   : > { %p1536_p7 = pnand %p1535_p4, %p1664_p5 }
 0x561   : > { %p1541_p11 = por %p1540_p10, %p1539_p9 }
 0x562   : > { %p1537_p8 = pneg %p1536_p7 }
 0x564   : > { %p1542_p12 = pnand %p1541_p11, %p1537_p8 }
 0x566   : > { %1545 = shalt.err (!%p1542_p12)
}
 0x567   : > { %1457 = dma.vmem_to_hbm [thread:$0]  (%p1664_p5), %s1941_s22, 128, %s1939_s8, %s1052_s9  }
 0x568 PF: > { %p1463_p13 = scmp.ge.s32.totalorder %s1580_s27, 2  ;;  %s1077_s23 = sand.u32 1, %s1568_s24  }
 0x569   : > { %s1078_s29 = scalar_lea.sflag [#allocation3], %s1077_s23 }
 0x56a   : > { %p1460_p0 = pnand %p1463_p13, %p1668_p6 }
 0x56c   : > { %p1461_p1 = pneg %p1460_p0 }
 0x56e   : > { %1563 = dma.done.wait (%p1461_p1), %s1078_s29, 128  }
 0x56f   : > { %1565 = vsyncadd (%p1461_p1), %s1078_s29, 4294967168  ;;  %p17_p2 = scmp.ge.s32.totalorder %s1651_s30, 4   ;;  %s1990_s24 = smov %s1572_s25 }
 0x570   : > { %s1991_s25 = smov %s1576_s26  ;;  %s1992_s26 = smov %s1662_s10 }
 0x571   : > { %s1993_s27 = smov %s1651_s30  ;;  %19 = sbr.rel (!%p17_p2) target bundleno = 3 (0x3), region = 89 }
 0x576   :  { %1083 = vsyncpa [#allocation3], 1 }
 0x577   :  { %1085 = vsyncpa [#allocation3 + $0x1], 1 }

</bundles_post_ra>
